<compile_context>
chip_gen: v6e
topology: v6e:2x2x1
jax: 0.10.0
libtpu: 0.0.40
codegen_flags: <defaults>
</compile_context>

<pallas_src>
import math

import jax
import jax.numpy as jnp
from jax.experimental import pallas as pl
from jax.experimental.pallas import tpu as pltpu

_SQRT2 = math.sqrt(2.0)

# 2/pi and a 3-way Cody-Waite split of pi/2 (2x the classic Cephes pi/4
# constants). q * _PI2_HI is exact in f32 for q up to ~2^14, so the leading
# cancellation in the reduction is exact.
_TWO_OVER_PI = 0.6366197723675814
_PI2_HI = 1.5703125
_PI2_MD = 4.837512969970703125e-4
_PI2_LO = 7.549789948768648e-8

# Minimax polynomial coefficients for sin/cos on [-pi/4, pi/4] (Cephes sinf/cosf).
_S1 = -1.6666654611e-1
_S2 = 8.3321608736e-3
_S3 = -1.9515295891e-4
_C1 = 4.166664568298827e-2
_C2 = -1.388731625493765e-3
_C3 = 2.443315711809948e-5


def _sincos_shared(y):
    """Return (sin(y), cos(y)) with ONE shared range reduction (f32, |y| <~ 1e4)."""
    q = jnp.floor(y * _TWO_OVER_PI + 0.5)          # nearest integer (floor lowers cleanly)
    qi = q.astype(jnp.int32)
    r = y - q * _PI2_HI                            # exact (leading bits cancel)
    r = r - q * _PI2_MD
    r = r - q * _PI2_LO
    z = r * r
    ps = ((_S3 * z + _S2) * z + _S1) * z * r + r                 # sin(r)
    pc = ((_C3 * z + _C2) * z + _C1) * z * z - 0.5 * z + 1.0     # cos(r)
    odd = (qi & 1) == 1
    # sin(y): quadrant table [ps, pc, -ps, -pc] indexed by q & 3.
    sin_y = jnp.where(odd, pc, ps) * jnp.where((qi & 2) == 2, -1.0, 1.0)
    # cos(y) = sin(y + pi/2): same table indexed by (q + 1) & 3.
    cos_y = jnp.where(odd, ps, pc) * jnp.where(((qi + 1) & 2) == 2, -1.0, 1.0)
    return sin_y, cos_y


def _pos_emb_kernel(x_ref, f_ref, o_ref):
    half = f_ref.shape[1]
    x = x_ref[...].astype(jnp.float32)            # (tile_n, 1)
    f = f_ref[...].astype(jnp.float32)            # (1, half)
    y = x * f                                     # broadcast outer product (VPU)
    sin_y, cos_y = _sincos_shared(y)
    scale = jnp.float32(_SQRT2)
    sin_y = (sin_y * scale).astype(o_ref.dtype)
    cos_y = (cos_y * scale).astype(o_ref.dtype)
    if half % 128 == 0:
        # Both halves start on 128-lane boundaries: two unmasked lane-dense stores.
        o_ref[:, :half] = sin_y
        o_ref[:, half:] = cos_y
    else:
        # half not lane-aligned (toy C=64): one full-width store instead of a
        # misaligned masked store starting at lane offset `half`.
        o_ref[...] = jnp.concatenate([sin_y, cos_y], axis=1)


def _round_up(v, m):
    return ((v + m - 1) // m) * m


def positional_embedding(x, freqs, *, tile_n=1024):
    """x: (N,) timesteps; freqs: (C//2,) float32. Returns (N, C) in x.dtype."""
    n = x.shape[0]
    half = freqs.shape[0]
    num_channels = 2 * half
    out_dtype = x.dtype

    # Sublane multiple of the OUTPUT dtype (8 rows for f32, 16 for bf16, ...).
    sub = max(8, 32 // jnp.dtype(out_dtype).itemsize)
    tile_n = _round_up(min(tile_n, n), sub)
    if n <= 2 * tile_n:
        # Guarantee >= 2 grid steps when n allows, so the "parallel" row axis
        # actually shards across both v7x TensorCores.
        tile_n = max(sub, _round_up(pl.cdiv(n, 2), sub))

    x2d = x.reshape(n, 1)
    f2d = freqs.reshape(1, half).astype(jnp.float32)

    return pl.pallas_call(
        _pos_emb_kernel,
        out_shape=jax.ShapeDtypeStruct((n, num_channels), out_dtype),
        grid=(pl.cdiv(n, tile_n),),
        in_specs=[
            pl.BlockSpec((tile_n, 1), lambda i: (i, 0)),
            pl.BlockSpec((1, half), lambda i: (0, 0)),   # grid-invariant, stays resident
        ],
        out_specs=pl.BlockSpec((tile_n, num_channels), lambda i: (i, 0)),
        compiler_params=pltpu.CompilerParams(
            dimension_semantics=("parallel",),
        ),
    )(x2d, f2d)


def make_freqs(num_channels):
    """Deterministic buffer init, identical to the PyTorch __init__ (log(10) per spec)."""
    half_dim = num_channels // 2
    emb = math.log(10) / (half_dim - 1)
    return jnp.exp(jnp.arange(half_dim, dtype=jnp.float32) * -emb)


def reference(x, freqs):
    y = x.astype(jnp.float32)[:, None] * freqs.astype(jnp.float32)[None, :]
    y = jnp.concatenate([jnp.sin(y), jnp.cos(y)], axis=1) * _SQRT2
    return y.astype(x.dtype)


if __name__ == "__main__":
    num_channels = 64
    freqs = make_freqs(num_channels)
    key = jax.random.PRNGKey(0)

    # Case 1: small batch, single tile.
    n = 8
    x = jax.random.uniform(key, (n,), dtype=jnp.float32) * 1000.0  # timestep-like magnitudes
    out = jax.block_until_ready(positional_embedding(x, freqs))
    ref = reference(x, freqs)
    assert out.shape == (n, num_channels), out.shape
    assert out.dtype == x.dtype, out.dtype
    assert jnp.allclose(out, ref, atol=1e-5, rtol=1e-5), "mismatch vs reference (n=8)"

    # Case 2: multi-tile grid path (n=24 -> two 16-row tiles, masked tail block).
    n2 = 24
    x2 = jax.random.uniform(jax.random.PRNGKey(1), (n2,), dtype=jnp.float32) * 1000.0
    out2 = jax.block_until_ready(positional_embedding(x2, freqs))
    ref2 = reference(x2, freqs)
    assert out2.shape == (n2, num_channels), out2.shape
    assert jnp.allclose(out2, ref2, atol=1e-5, rtol=1e-5), "mismatch vs reference (n=24)"

    print("KERNEL_OK")
</pallas_src>

<mosaic_0001>
module attributes {stable_mosaic.version = 11 : i64} {
  func.func @_pos_emb_kernel(%arg0: i32, %arg1: memref<8x1xf32, #tpu.memory_space<vmem>>, %arg2: memref<1x32xf32, #tpu.memory_space<vmem>>, %arg3: memref<8x64xf32, #tpu.memory_space<vmem>>) attributes {dimension_semantics = [#tpu.dimension_semantics<parallel>], iteration_bounds = array<i64: 1>, scalar_prefetch = 0 : i64, scratch_operands = 0 : i64, tpu.core_type = #tpu.core_type<tc>, window_params = [{transform_indices = @transform_0, window_bounds = array<i64: 8, 1>}, {pipeline_mode = #tpu.pipeline_mode<synchronous>, transform_indices = @transform_1, window_bounds = array<i64: 1, 32>}, {transform_indices = @transform_2, window_bounds = array<i64: 8, 64>}]} {
    %c0 = arith.constant 0 : index
    %c0_0 = arith.constant 0 : index
    %0 = vector.load %arg1[%c0, %c0_0] : memref<8x1xf32, #tpu.memory_space<vmem>>, vector<8x1xf32>
    %c0_1 = arith.constant 0 : index
    %c0_2 = arith.constant 0 : index
    %1 = vector.load %arg2[%c0_1, %c0_2] : memref<1x32xf32, #tpu.memory_space<vmem>>, vector<1x32xf32>
    %2 = vector.broadcast %0 : vector<8x1xf32> to vector<8x32xf32>
    %3 = vector.broadcast %1 : vector<1x32xf32> to vector<8x32xf32>
    %4 = arith.mulf %2, %3 : vector<8x32xf32>
    %cst = arith.constant 0.636619746 : f32
    %5 = vector.broadcast %cst : f32 to vector<8x32xf32>
    %6 = arith.mulf %4, %5 : vector<8x32xf32>
    %cst_3 = arith.constant 5.000000e-01 : f32
    %7 = vector.broadcast %cst_3 : f32 to vector<8x32xf32>
    %8 = arith.addf %6, %7 : vector<8x32xf32>
    %9 = math.floor %8 : vector<8x32xf32>
    %10 = arith.fptosi %9 : vector<8x32xf32> to vector<8x32xi32>
    %cst_4 = arith.constant 1.5703125 : f32
    %11 = vector.broadcast %cst_4 : f32 to vector<8x32xf32>
    %12 = arith.mulf %9, %11 : vector<8x32xf32>
    %13 = arith.subf %4, %12 : vector<8x32xf32>
    %cst_5 = arith.constant 4.83751297E-4 : f32
    %14 = vector.broadcast %cst_5 : f32 to vector<8x32xf32>
    %15 = arith.mulf %9, %14 : vector<8x32xf32>
    %16 = arith.subf %13, %15 : vector<8x32xf32>
    %cst_6 = arith.constant 7.549790e-08 : f32
    %17 = vector.broadcast %cst_6 : f32 to vector<8x32xf32>
    %18 = arith.mulf %9, %17 : vector<8x32xf32>
    %19 = arith.subf %16, %18 : vector<8x32xf32>
    %20 = arith.mulf %19, %19 : vector<8x32xf32>
    %cst_7 = arith.constant -1.95152956E-4 : f32
    %21 = vector.broadcast %cst_7 : f32 to vector<8x32xf32>
    %22 = arith.mulf %21, %20 : vector<8x32xf32>
    %cst_8 = arith.constant 0.00833216123 : f32
    %23 = vector.broadcast %cst_8 : f32 to vector<8x32xf32>
    %24 = arith.addf %22, %23 : vector<8x32xf32>
    %25 = arith.mulf %24, %20 : vector<8x32xf32>
    %cst_9 = arith.constant -0.166666552 : f32
    %26 = vector.broadcast %cst_9 : f32 to vector<8x32xf32>
    %27 = arith.addf %25, %26 : vector<8x32xf32>
    %28 = arith.mulf %27, %20 : vector<8x32xf32>
    %29 = arith.mulf %28, %19 : vector<8x32xf32>
    %30 = arith.addf %29, %19 : vector<8x32xf32>
    %cst_10 = arith.constant 2.44331568E-5 : f32
    %31 = vector.broadcast %cst_10 : f32 to vector<8x32xf32>
    %32 = arith.mulf %31, %20 : vector<8x32xf32>
    %cst_11 = arith.constant -0.00138873165 : f32
    %33 = vector.broadcast %cst_11 : f32 to vector<8x32xf32>
    %34 = arith.addf %32, %33 : vector<8x32xf32>
    %35 = arith.mulf %34, %20 : vector<8x32xf32>
    %cst_12 = arith.constant 0.0416666456 : f32
    %36 = vector.broadcast %cst_12 : f32 to vector<8x32xf32>
    %37 = arith.addf %35, %36 : vector<8x32xf32>
    %38 = arith.mulf %37, %20 : vector<8x32xf32>
    %39 = arith.mulf %38, %20 : vector<8x32xf32>
    %cst_13 = arith.constant 5.000000e-01 : f32
    %40 = vector.broadcast %cst_13 : f32 to vector<8x32xf32>
    %41 = arith.mulf %40, %20 : vector<8x32xf32>
    %42 = arith.subf %39, %41 : vector<8x32xf32>
    %cst_14 = arith.constant 1.000000e+00 : f32
    %43 = vector.broadcast %cst_14 : f32 to vector<8x32xf32>
    %44 = arith.addf %42, %43 : vector<8x32xf32>
    %c1_i32 = arith.constant 1 : i32
    %45 = vector.broadcast %c1_i32 : i32 to vector<8x32xi32>
    %46 = arith.andi %10, %45 : vector<8x32xi32>
    %c1_i32_15 = arith.constant 1 : i32
    %47 = vector.broadcast %c1_i32_15 : i32 to vector<8x32xi32>
    %48 = arith.cmpi eq, %46, %47 : vector<8x32xi32>
    %49 = arith.select %48, %44, %30 : vector<8x32xi1>, vector<8x32xf32>
    %c2_i32 = arith.constant 2 : i32
    %50 = vector.broadcast %c2_i32 : i32 to vector<8x32xi32>
    %51 = arith.andi %10, %50 : vector<8x32xi32>
    %c2_i32_16 = arith.constant 2 : i32
    %52 = vector.broadcast %c2_i32_16 : i32 to vector<8x32xi32>
    %53 = arith.cmpi eq, %51, %52 : vector<8x32xi32>
    %cst_17 = arith.constant -1.000000e+00 : f32
    %cst_18 = arith.constant 1.000000e+00 : f32
    %54 = vector.broadcast %cst_17 : f32 to vector<8x32xf32>
    %55 = vector.broadcast %cst_18 : f32 to vector<8x32xf32>
    %56 = arith.select %53, %54, %55 : vector<8x32xi1>, vector<8x32xf32>
    %57 = arith.mulf %49, %56 : vector<8x32xf32>
    %58 = arith.select %48, %30, %44 : vector<8x32xi1>, vector<8x32xf32>
    %c1_i32_19 = arith.constant 1 : i32
    %59 = vector.broadcast %c1_i32_19 : i32 to vector<8x32xi32>
    %60 = arith.addi %10, %59 : vector<8x32xi32>
    %c2_i32_20 = arith.constant 2 : i32
    %61 = vector.broadcast %c2_i32_20 : i32 to vector<8x32xi32>
    %62 = arith.andi %60, %61 : vector<8x32xi32>
    %c2_i32_21 = arith.constant 2 : i32
    %63 = vector.broadcast %c2_i32_21 : i32 to vector<8x32xi32>
    %64 = arith.cmpi eq, %62, %63 : vector<8x32xi32>
    %cst_22 = arith.constant -1.000000e+00 : f32
    %cst_23 = arith.constant 1.000000e+00 : f32
    %65 = vector.broadcast %cst_22 : f32 to vector<8x32xf32>
    %66 = vector.broadcast %cst_23 : f32 to vector<8x32xf32>
    %67 = arith.select %64, %65, %66 : vector<8x32xi1>, vector<8x32xf32>
    %68 = arith.mulf %58, %67 : vector<8x32xf32>
    %cst_24 = arith.constant 1.41421354 : f32
    %69 = vector.broadcast %cst_24 : f32 to vector<8x32xf32>
    %70 = arith.mulf %57, %69 : vector<8x32xf32>
    %cst_25 = arith.constant 1.41421354 : f32
    %71 = vector.broadcast %cst_25 : f32 to vector<8x32xf32>
    %72 = arith.mulf %68, %71 : vector<8x32xf32>
    %73 = tpu.concatenate %70, %72 in 1 : vector<8x32xf32>, vector<8x32xf32> -> vector<8x64xf32>
    %c0_26 = arith.constant 0 : index
    %c0_27 = arith.constant 0 : index
    %74 = vector.load %arg3[%c0_26, %c0_27] : memref<8x64xf32, #tpu.memory_space<vmem>>, vector<8x64xf32>
    tpu.vector_store %arg3[%c0_26, %c0_27], %73 {strides = array<i32>} : memref<8x64xf32, #tpu.memory_space<vmem>>, vector<8x64xf32>,
    return
  }
  func.func @transform_0(%arg0: i32) -> (i32, i32) {
    %c0_i32 = arith.constant 0 : i32
    %c0_i32_0 = arith.constant 0 : i32
    return %arg0, %c0_i32 : i32, i32
  }
  func.func @transform_1(%arg0: i32) -> (i32, i32) {
    %c0_i32 = arith.constant 0 : i32
    %c0_i32_0 = arith.constant 0 : i32
    %c0_i32_1 = arith.constant 0 : i32
    return %c0_i32, %c0_i32_0 : i32, i32
  }
  func.func @transform_2(%arg0: i32) -> (i32, i32) {
    %c0_i32 = arith.constant 0 : i32
    %c0_i32_0 = arith.constant 0 : i32
    return %arg0, %c0_i32 : i32, i32
  }
}

</mosaic_0001>

<bundles_post_ra>
// kernel: tpu_custom_call.1
= control target key start
LH: loop header
LB: loop body
LE: loop exit
PB: predicated region body
PF: predicated region fallthrough
CT: control target
= control target key end

     0   :  { %s148_s0 = inlined_call_operand.vmem [shape: f32[8,1], index: 0, kind: input, shape index: {}]   ;;  %s149_s1 = inlined_call_operand.vmem [shape: f32[1,32], index: 1, kind: input, shape index: {}]   ;;  %s150_s2 = inlined_call_operand.hbm [shape: f32[8,64], index: 2, kind: output, shape index: {}]  }
   0x1   :  { %v12_v0 = vld [vmem:[%s148_s0] sm:$0xff] }
   0x2   :  { %7 = vsyncpa [#allocation3], 0  ;;  %v120_v1 = vmov 0   ;;  %v90_v2 = vld [vmem:[%s149_s1] ss:$0 sm:$0xff]  ;;  %v121_v17 = vmov 1.0  }
   0x3   :  { %97 = vset.pattern.permute.xlu0 %v120_v1  ;;  %s122_s0 = smov 32   ;;  %s123_s1 = smov [#allocation2]   ;;  %vm72_vm3 = vcmask 261120   ;;  %vm74_vm4 = vcmask 523264  }
   0x4   :  { %16 = vperm.xlu0 %97, %v12_v0   ;;  %s82_s13 = sshll.u32 %s123_s1, 4  ;;  %s83_s13 = int_to_ptr.vmem [resolvable:$true] %s82_s13 }
   0x5   :  { %s98_s14 = scalar_lea.vmem %s83_s13, 128  ;;  %p103_p1 = scmp.lt.s32.totalorder %s83_s13, %s83_s13 }
   0x6   :  { %p99_p0 = scmp.ne.s32.totalorder %s83_s13, %s98_s14  ;;  %p104_p2 = scmp.lt.s32.totalorder %s98_s14, %s98_s14 }
   0x8   :  { %p105_p3 = por %p104_p2, %p103_p1 }
   0xa   :  { %p106_p4 = pnand %p105_p3, %p99_p0 }
  0x7f   :  { %v17_v3 = vpop.permute.xlu0 %16 }
  0x80   :  { %v25_v4 = vmul.f32 %v90_v2, %v17_v3 }
  0x82   :  { %v26_v5 = vmul.f32 0.63661975, %v25_v4 }
  0x84   :  { %v27_v6 = vadd.f32 0.5, %v26_v5 }
  0x86   :  { %v28_v7 = vfloor.f32 %v27_v6 }
  0x88   :  { %v91_v8 = vtrunc.f32 %v28_v7  ;;  %v30_v9 = vmul.f32 1.5703125, %v28_v7  ;;  %v32_v11 = vmul.f32 0.0004837513, %v28_v7  ;;  %v34_v14 = vmul.f32 7.54979e-08, %v28_v7 }
  0x8a   :  { %v31_v10 = vsub.f32 %v25_v4, %v30_v9  ;;  %v92_v12 = vcvt.f32.s32 %v91_v8 }
  0x8c   :  { %v33_v13 = vsub.f32 %v31_v10, %v32_v11  ;;  %v56_v15 = vand.u32 2, %v92_v12  ;;  %v61_v26 = vadd.s32 1, %v92_v12  ;;  %v53_v35 = vand.u32 1, %v92_v12 }
  0x8e   :  { %v35_v16 = vsub.f32 %v33_v13, %v34_v14  ;;  %vm57_vm0 = vcmp.eq.s32.totalorder %v56_v15, 2  ;;  %v62_v31 = vand.u32 2, %v61_v26  ;;  %vm54_vm2 = vcmp.eq.s32.totalorder %v53_v35, 1 }
  0x8f   :  { %v58_v18 = vsel %vm57_vm0, -1.0, %v121_v17 }
  0x90   :  { %v36_v19 = vmul.f32 %v35_v16, %v35_v16  ;;  %vm63_vm1 = vcmp.eq.s32.totalorder %v62_v31, 2 }
  0x91   :  { %v64_v40 = vsel %vm63_vm1, -1.0, %v121_v17 }
  0x92   :  { %v37_v20 = vmul.f32 -0.00019515296, %v36_v19  ;;  %v44_v21 = vmul.f32 2.4433157e-05, %v36_v19  ;;  %v50_v34 = vmul.f32 0.5, %v36_v19 }
  0x94   :  { %v38_v22 = vadd.f32 0.008332161, %v37_v20  ;;  %v45_v23 = vadd.f32 -0.0013887316, %v44_v21 }
  0x96   :  { %v39_v24 = vmul.f32 %v38_v22, %v36_v19  ;;  %v46_v25 = vmul.f32 %v45_v23, %v36_v19 }
  0x98   :  { %v40_v27 = vadd.f32 -0.16666655, %v39_v24  ;;  %v47_v28 = vadd.f32 0.041666646, %v46_v25 }
  0x9a   :  { %v41_v29 = vmul.f32 %v40_v27, %v36_v19  ;;  %v48_v30 = vmul.f32 %v47_v28, %v36_v19 }
  0x9c   :  { %v42_v32 = vmul.f32 %v41_v29, %v35_v16  ;;  %v49_v33 = vmul.f32 %v48_v30, %v36_v19 }
  0x9e   :  { %v51_v36 = vsub.f32 %v49_v33, %v50_v34  ;;  %v43_v37 = vadd.f32 %v42_v32, %v35_v16 }
  0xa0   :  { %v52_v38 = vadd.f32 1.0, %v51_v36 }
  0xa2   :  { %v60_v39 = vsel %vm54_vm2, %v43_v37, %v52_v38  ;;  %v55_v41 = vsel %vm54_vm2, %v52_v38, %v43_v37 }
  0xa3   :  { %v65_v42 = vmul.f32 %v64_v40, %v60_v39  ;;  %v59_v43 = vmul.f32 %v58_v18, %v55_v41 }
  0xa5   :  { %v67_v44 = vmul.f32 1.4142135, %v65_v42  ;;  %v66_v45 = vmul.f32 1.4142135, %v59_v43 }
  0xa7   :  { %69 = vrot.lane.b32.xlu0 %v67_v44, %s122_s0 }
 0x119   :  { %v70_v46 = vpop.permute.xlu0 %69 }
 0x11a   :  { %v73_v47 = vsel %vm72_vm3, %v66_v45, %v70_v46 }
 0x11b   :  { %75 = vst.msk [vmem:[#allocation2] sm:$0xff] %vm74_vm4, %v73_v47 }
 0x11c   :  { %109 = shalt.err (!%p106_p4)
}
 0x11d   :  { %85 = dma.vmem_to_hbm [thread:$0]  %s83_s13, 128, %s150_s2, [#allocation3]  }
 0x11e   :  { %118 = dma.done.wait [#allocation3], 128  }
 0x11f   :  { %119 = vsyncadd [#allocation3], 4294967168 }
 0x120   :  { %89 = vsyncpa [#allocation3], 1 }

</bundles_post_ra>
